<compile_context>
chip_gen: v5e
topology: v5e:2x2
jax: 0.10.0
libtpu: 0.0.40
codegen_flags: <defaults>
</compile_context>

<pallas_src>
import jax
import jax.numpy as jnp
import numpy as np
from jax.experimental import pallas as pl
from jax.experimental.pallas import tpu as pltpu


def _sigm(z):
    # sigmoid(z) == 0.5 * tanh(0.5 * z) + 0.5  -> a single EUP op.
    return 0.5 * jnp.tanh(0.5 * z) + 0.5


def lstm_critic_kernel(x_ref, lens_ref, maxlen_ref,
                       wih_cat_ref, whh_f_ref, whh_b_ref, b_cat_ref,
                       w1a_ref, w1b_ref, b1_ref, w2_ref, b2_ref,
                       out_ref, gx_ref):
    B = lens_ref.shape[0]          # padded batch
    D = whh_f_ref.shape[0]         # d_model
    D4 = 4 * D

    lens = lens_ref[...]           # (B, 1) int32
    max_len = maxlen_ref[0]        # scalar int32 from SMEM

    # ---- Hoisted input projection: one large bf16 MXU matmul covering both
    #      directions, with biases folded in.  gx[:, :4D] = fwd, gx[:, 4D:] = bwd.
    gx = jnp.dot(x_ref[...], wih_cat_ref[...],
                 preferred_element_type=jnp.float32) + b_cat_ref[...]
    gx_ref[...] = gx               # (T*B, 8D) f32 staging buffer in VMEM

    # Hoist weight loads out of the serial loops.
    whh_f = whh_f_ref[...]         # (D, 4D) bf16
    whh_b = whh_b_ref[...]         # (D, 4D) bf16

    zeros = jnp.zeros((B, D), jnp.float32)

    def recur(gates_x, h, c, whh):
        gates = gates_x + jnp.dot(h.astype(jnp.bfloat16), whh,
                                  preferred_element_type=jnp.float32)
        i = _sigm(gates[:, 0 * D:1 * D])
        f = _sigm(gates[:, 1 * D:2 * D])
        g = jnp.tanh(gates[:, 2 * D:3 * D])
        o = _sigm(gates[:, 3 * D:4 * D])
        c_new = f * c + i * g
        h_new = o * jnp.tanh(c_new)
        return h_new, c_new

    # Forward direction: t = 0 .. max_len-1, only update rows where t < len.
    # After the loop h holds the state at step len-1 (packed-seq semantics).
    def fwd_body(t, carry):
        h, c = carry
        row = pl.multiple_of(t * B, B)
        gx_t = gx_ref[pl.ds(row, B), 0:D4]          # (B, 4D)
        h_new, c_new = recur(gx_t, h, c, whh_f)
        valid = t < lens                            # (B, 1) bool
        return jnp.where(valid, h_new, h), jnp.where(valid, c_new, c)

    h_fwd, _ = jax.lax.fori_loop(0, max_len, fwd_body, (zeros, zeros))

    # Backward direction: t = max_len-1 .. 0, only update where t < len.
    # State stays zero until t reaches len-1, then runs down to t=0, giving
    # exactly the packed bidirectional final backward hidden.
    def bwd_body(i, carry):
        h, c = carry
        t = max_len - 1 - i
        row = pl.multiple_of(t * B, B)
        gx_t = gx_ref[pl.ds(row, B), D4:2 * D4]     # (B, 4D)
        h_new, c_new = recur(gx_t, h, c, whh_b)
        valid = t < lens
        return jnp.where(valid, h_new, h), jnp.where(valid, c_new, c)

    h_bwd, _ = jax.lax.fori_loop(0, max_len, bwd_body, (zeros, zeros))

    # MLP head.  concat([h_fwd, h_bwd]) @ W1 == h_fwd @ W1a + h_bwd @ W1b.
    hid = (jnp.dot(h_fwd.astype(jnp.bfloat16), w1a_ref[...],
                   preferred_element_type=jnp.float32)
           + jnp.dot(h_bwd.astype(jnp.bfloat16), w1b_ref[...],
                     preferred_element_type=jnp.float32)
           + b1_ref[...])
    hid = jnp.maximum(hid, 0.0)                                   # ReLU
    logit = jnp.dot(hid.astype(jnp.bfloat16), w2_ref[...],
                    preferred_element_type=jnp.float32) + b2_ref[...]
    out_ref[...] = _sigm(logit)                                   # (B, 1)


def init_params(key, D):
    """PyTorch-shaped params, pre-transposed for the kernel (all f32)."""
    ks = jax.random.split(key, 12)
    s = 1.0 / np.sqrt(D)

    def u(k, shape):
        return jax.random.uniform(k, shape, jnp.float32, -s, s)

    w_ih_f, w_hh_f = u(ks[0], (4 * D, D)), u(ks[1], (4 * D, D))
    b_ih_f, b_hh_f = u(ks[2], (4 * D,)), u(ks[3], (4 * D,))
    w_ih_b, w_hh_b = u(ks[4], (4 * D, D)), u(ks[5], (4 * D, D))
    b_ih_b, b_hh_b = u(ks[6], (4 * D,)), u(ks[7], (4 * D,))
    w1, b1 = u(ks[8], (D, 2 * D)), u(ks[9], (D,))
    w2, b2 = u(ks[10], (1, D)), u(ks[11], (1,))
    return dict(
        wih_f=w_ih_f.T, whh_f=w_hh_f.T, b_f=(b_ih_f + b_hh_f).reshape(1, 4 * D),
        wih_b=w_ih_b.T, whh_b=w_hh_b.T, b_b=(b_ih_b + b_hh_b).reshape(1, 4 * D),
        w1=w1.T, b1=b1.reshape(1, D), w2=w2.T, b2=b2.reshape(1, 1),
    )


def lstm_critic_forward(trg, mask, params):
    """trg: (B, T, D) float32, mask: (B, T) 0/1. Returns (B, 1) in sorted order
    (same as the PyTorch module, which does not un-sort)."""
    B, T, D = trg.shape
    lens = mask.sum(-1).astype(jnp.int32)          # (B,)
    order = jnp.argsort(-lens)                     # descending, stable
    lens_s = lens[order]
    x_s = jnp.transpose(trg[order], (1, 0, 2))     # (T, B, D) sorted, time-major

    # Pad batch up to a multiple of 8 (f32 sublane) with zero-length rows.
    B_pad = max(8, ((B + 7) // 8) * 8)
    pad = B_pad - B
    if pad:
        x_s = jnp.pad(x_s, ((0, 0), (0, pad), (0, 0)))
        lens_s = jnp.pad(lens_s, ((0, pad),))

    x_flat = x_s.reshape(T * B_pad, D).astype(jnp.bfloat16)
    lens_col = lens_s.reshape(B_pad, 1)
    max_len = jnp.max(lens_s).reshape(1).astype(jnp.int32)

    bf16 = jnp.bfloat16
    wih_cat = jnp.concatenate([params['wih_f'], params['wih_b']], axis=1).astype(bf16)
    b_cat = jnp.concatenate([params['b_f'], params['b_b']], axis=1)      # f32 (1, 8D)
    whh_f = params['whh_f'].astype(bf16)
    whh_b = params['whh_b'].astype(bf16)
    w1a = params['w1'][:D, :].astype(bf16)
    w1b = params['w1'][D:, :].astype(bf16)
    w2 = params['w2'].astype(bf16)

    args = (x_flat, lens_col, max_len,
            wih_cat, whh_f, whh_b, b_cat,
            w1a, w1b, params['b1'], w2, params['b2'])

    in_specs = ([pl.BlockSpec(memory_space=pltpu.MemorySpace.VMEM),
                 pl.BlockSpec(memory_space=pltpu.MemorySpace.VMEM),
                 pl.BlockSpec(memory_space=pltpu.MemorySpace.SMEM)]
                + [pl.BlockSpec(memory_space=pltpu.MemorySpace.VMEM)
                   for _ in range(9)])

    out = pl.pallas_call(
        lstm_critic_kernel,
        out_shape=jax.ShapeDtypeStruct((B_pad, 1), jnp.float32),
        in_specs=in_specs,
        out_specs=pl.BlockSpec(memory_space=pltpu.MemorySpace.VMEM),
        scratch_shapes=[pltpu.VMEM((T * B_pad, 8 * D), jnp.float32)],
    )(*args)
    return out[:B]


def reference_forward(trg, mask, params):
    """Pure numpy f32 reference with identical semantics (sanity check)."""
    trg = np.asarray(trg, np.float32)
    mask = np.asarray(mask, np.float32)
    B, T, D = trg.shape
    lens = mask.sum(-1).astype(np.int64)
    order = np.argsort(-lens, kind="stable")
    lens_s = lens[order]
    x_s = np.transpose(trg[order], (1, 0, 2))      # (T, B, D)

    def sig(z):
        return 1.0 / (1.0 + np.exp(-z))

    def run(steps, wih, whh, b):
        h = np.zeros((B, D), np.float32)
        c = np.zeros((B, D), np.float32)
        for t in steps:
            gates = x_s[t] @ wih + h @ whh + b
            i = sig(gates[:, 0 * D:1 * D])
            f = sig(gates[:, 1 * D:2 * D])
            g = np.tanh(gates[:, 2 * D:3 * D])
            o = sig(gates[:, 3 * D:4 * D])
            c_new = f * c + i * g
            h_new = o * np.tanh(c_new)
            valid = (t < lens_s)[:, None]
            h = np.where(valid, h_new, h)
            c = np.where(valid, c_new, c)
        return h

    p = {k: np.asarray(v, np.float32) for k, v in params.items()}
    h_fwd = run(range(T), p['wih_f'], p['whh_f'], p['b_f'])
    h_bwd = run(range(T - 1, -1, -1), p['wih_b'], p['whh_b'], p['b_b'])
    feat = np.concatenate([h_fwd, h_bwd], axis=-1)
    hid = np.maximum(feat @ p['w1'] + p['b1'], 0.0)
    return sig(hid @ p['w2'] + p['b2'])


if __name__ == "__main__":
    B, T, D = 4, 8, 32   # batch, seq, d_model
    key = jax.random.PRNGKey(0)
    k_trg, k_par = jax.random.split(key)

    trg = jax.random.normal(k_trg, (B, T, D), jnp.float32)
    lengths = jnp.array([5, 8, 3, 8], dtype=jnp.int32)
    mask = (jnp.arange(T)[None, :] < lengths[:, None]).astype(jnp.float32)

    params = init_params(k_par, D)

    out = lstm_critic_forward(trg, mask, params)
    out = jax.block_until_ready(out)

    ref = reference_forward(trg, mask, params)
    # bf16 matmul operands (f32 accumulation) -> loosened tolerance vs f32 ref.
    np.testing.assert_allclose(np.asarray(out), ref, rtol=5e-2, atol=2e-2)

    print("KERNEL_OK")
</pallas_src>

<mosaic_0001>
module attributes {stable_mosaic.version = 11 : i64} {
  func.func @lstm_critic_kernel(%arg0: memref<64x32xbf16, #tpu.memory_space<vmem>>, %arg1: memref<8x1xi32, #tpu.memory_space<vmem>>, %arg2: memref<1xi32, #tpu.memory_space<smem>>, %arg3: memref<32x256xbf16, #tpu.memory_space<vmem>>, %arg4: memref<32x128xbf16, #tpu.memory_space<vmem>>, %arg5: memref<32x128xbf16, #tpu.memory_space<vmem>>, %arg6: memref<1x256xf32, #tpu.memory_space<vmem>>, %arg7: memref<32x32xbf16, #tpu.memory_space<vmem>>, %arg8: memref<32x32xbf16, #tpu.memory_space<vmem>>, %arg9: memref<1x32xf32, #tpu.memory_space<vmem>>, %arg10: memref<32x1xbf16, #tpu.memory_space<vmem>>, %arg11: memref<1x1xf32, #tpu.memory_space<vmem>>, %arg12: memref<8x1xf32, #tpu.memory_space<vmem>>, %arg13: memref<64x256xf32, #tpu.memory_space<vmem>>) attributes {dimension_semantics = [], scalar_prefetch = 0 : i64, scratch_operands = 1 : i64, tpu.core_type = #tpu.core_type<tc>} {
    %c0 = arith.constant 0 : index
    %c0_0 = arith.constant 0 : index
    %0 = vector.load %arg1[%c0, %c0_0] : memref<8x1xi32, #tpu.memory_space<vmem>>, vector<8x1xi32>
    %c0_1 = arith.constant 0 : index
    %1 = memref.load %arg2[%c0_1] : memref<1xi32, #tpu.memory_space<smem>>
    %c0_2 = arith.constant 0 : index
    %c0_3 = arith.constant 0 : index
    %2 = vector.load %arg0[%c0_2, %c0_3] : memref<64x32xbf16, #tpu.memory_space<vmem>>, vector<64x32xbf16>
    %c0_4 = arith.constant 0 : index
    %c0_5 = arith.constant 0 : index
    %3 = vector.load %arg3[%c0_4, %c0_5] : memref<32x256xbf16, #tpu.memory_space<vmem>>, vector<32x256xbf16>
    %cst = arith.constant dense<0.000000e+00> : vector<64x256xf32>
    %4 = tpu.matmul %2, %3, %cst {dimension_numbers = #tpu.dot_dimension_numbers<[1], [0], [0], [1], [0, 0, 1, 1], [], []>} : vector<64x32xbf16>, vector<32x256xbf16>, vector<64x256xf32> -> vector<64x256xf32>
    %c0_6 = arith.constant 0 : index
    %c0_7 = arith.constant 0 : index
    %5 = vector.load %arg6[%c0_6, %c0_7] : memref<1x256xf32, #tpu.memory_space<vmem>>, vector<1x256xf32>
    %6 = vector.broadcast %5 : vector<1x256xf32> to vector<64x256xf32>
    %7 = arith.addf %4, %6 : vector<64x256xf32>
    %c0_8 = arith.constant 0 : index
    %c0_9 = arith.constant 0 : index
    %8 = vector.load %arg13[%c0_8, %c0_9] : memref<64x256xf32, #tpu.memory_space<vmem>>, vector<64x256xf32>
    tpu.vector_store %arg13[%c0_8, %c0_9], %7 {strides = array<i32>} : memref<64x256xf32, #tpu.memory_space<vmem>>, vector<64x256xf32>,
    %c0_10 = arith.constant 0 : index
    %c0_11 = arith.constant 0 : index
    %9 = vector.load %arg4[%c0_10, %c0_11] : memref<32x128xbf16, #tpu.memory_space<vmem>>, vector<32x128xbf16>
    %c0_12 = arith.constant 0 : index
    %c0_13 = arith.constant 0 : index
    %10 = vector.load %arg5[%c0_12, %c0_13] : memref<32x128xbf16, #tpu.memory_space<vmem>>, vector<32x128xbf16>
    %cst_14 = arith.constant 0.000000e+00 : f32
    %11 = vector.broadcast %cst_14 : f32 to vector<8x32xf32>
    %c0_i32 = arith.constant 0 : i32
    %12 = arith.subi %1, %c0_i32 : i32
    %13 = arith.addi %c0_i32, %12 : i32
    %c1_i32 = arith.constant 1 : i32
    %14:2 = scf.for %arg14 = %c0_i32 to %13 step %c1_i32 iter_args(%arg15 = %11, %arg16 = %11) -> (vector<8x32xf32>, vector<8x32xf32>)  : i32 {
      %c8_i32 = arith.constant 8 : i32
      %44 = arith.muli %arg14, %c8_i32 : i32
      %45 = tpu.assume_multiple %44, 8 : i32
      %46 = arith.index_cast %45 : i32 to index
      %c0_36 = arith.constant 0 : index
      %47 = vector.load %arg13[%46, %c0_36] : memref<64x256xf32, #tpu.memory_space<vmem>>, vector<8x128xf32>
      %48 = arith.truncf %arg15 : vector<8x32xf32> to vector<8x32xbf16>
      %cst_37 = arith.constant dense<0.000000e+00> : vector<8x128xf32>
      %49 = tpu.matmul %48, %9, %cst_37 {dimension_numbers = #tpu.dot_dimension_numbers<[1], [0], [0], [1], [0, 0, 1, 1], [], []>} : vector<8x32xbf16>, vector<32x128xbf16>, vector<8x128xf32> -> vector<8x128xf32>
      %50 = arith.addf %47, %49 : vector<8x128xf32>
      %51 = vector.extract_strided_slice %50 {offsets = [0, 0], sizes = [8, 32], strides = [1, 1]} : vector<8x128xf32> to vector<8x32xf32>
      %cst_38 = arith.constant 5.000000e-01 : f32
      %52 = vector.broadcast %cst_38 : f32 to vector<8x32xf32>
      %53 = arith.mulf %52, %51 : vector<8x32xf32>
      %54 = math.tanh %53 : vector<8x32xf32>
      %cst_39 = arith.constant 5.000000e-01 : f32
      %55 = vector.broadcast %cst_39 : f32 to vector<8x32xf32>
      %56 = arith.mulf %55, %54 : vector<8x32xf32>
      %cst_40 = arith.constant 5.000000e-01 : f32
      %57 = vector.broadcast %cst_40 : f32 to vector<8x32xf32>
      %58 = arith.addf %56, %57 : vector<8x32xf32>
      %59 = vector.extract_strided_slice %50 {offsets = [0, 32], sizes = [8, 32], strides = [1, 1]} : vector<8x128xf32> to vector<8x32xf32>
      %cst_41 = arith.constant 5.000000e-01 : f32
      %60 = vector.broadcast %cst_41 : f32 to vector<8x32xf32>
      %61 = arith.mulf %60, %59 : vector<8x32xf32>
      %62 = math.tanh %61 : vector<8x32xf32>
      %cst_42 = arith.constant 5.000000e-01 : f32
      %63 = vector.broadcast %cst_42 : f32 to vector<8x32xf32>
      %64 = arith.mulf %63, %62 : vector<8x32xf32>
      %cst_43 = arith.constant 5.000000e-01 : f32
      %65 = vector.broadcast %cst_43 : f32 to vector<8x32xf32>
      %66 = arith.addf %64, %65 : vector<8x32xf32>
      %67 = vector.extract_strided_slice %50 {offsets = [0, 64], sizes = [8, 32], strides = [1, 1]} : vector<8x128xf32> to vector<8x32xf32>
      %68 = math.tanh %67 : vector<8x32xf32>
      %69 = vector.extract_strided_slice %50 {offsets = [0, 96], sizes = [8, 32], strides = [1, 1]} : vector<8x128xf32> to vector<8x32xf32>
      %cst_44 = arith.constant 5.000000e-01 : f32
      %70 = vector.broadcast %cst_44 : f32 to vector<8x32xf32>
      %71 = arith.mulf %70, %69 : vector<8x32xf32>
      %72 = math.tanh %71 : vector<8x32xf32>
      %cst_45 = arith.constant 5.000000e-01 : f32
      %73 = vector.broadcast %cst_45 : f32 to vector<8x32xf32>
      %74 = arith.mulf %73, %72 : vector<8x32xf32>
      %cst_46 = arith.constant 5.000000e-01 : f32
      %75 = vector.broadcast %cst_46 : f32 to vector<8x32xf32>
      %76 = arith.addf %74, %75 : vector<8x32xf32>
      %77 = arith.mulf %66, %arg16 : vector<8x32xf32>
      %78 = arith.mulf %58, %68 : vector<8x32xf32>
      %79 = arith.addf %77, %78 : vector<8x32xf32>
      %80 = math.tanh %79 : vector<8x32xf32>
      %81 = arith.mulf %76, %80 : vector<8x32xf32>
      %82 = vector.broadcast %arg14 : i32 to vector<8x1xi32>
      %83 = arith.cmpi slt, %82, %0 : vector<8x1xi32>
      %84 = vector.shape_cast %83 : vector<8x1xi1> to vector<8x1xi1>
      %85 = vector.broadcast %84 : vector<8x1xi1> to vector<8x32xi1>
      %86 = arith.select %85, %81, %arg15 : vector<8x32xi1>, vector<8x32xf32>
      %87 = vector.shape_cast %83 : vector<8x1xi1> to vector<8x1xi1>
      %88 = vector.broadcast %87 : vector<8x1xi1> to vector<8x32xi1>
      %89 = arith.select %88, %79, %arg16 : vector<8x32xi1>, vector<8x32xf32>
      scf.yield %86, %89 : vector<8x32xf32>, vector<8x32xf32>
    }
    %c0_i32_15 = arith.constant 0 : i32
    %15 = arith.subi %1, %c0_i32_15 : i32
    %16 = arith.addi %c0_i32_15, %15 : i32
    %c1_i32_16 = arith.constant 1 : i32
    %17:2 = scf.for %arg14 = %c0_i32_15 to %16 step %c1_i32_16 iter_args(%arg15 = %11, %arg16 = %11) -> (vector<8x32xf32>, vector<8x32xf32>)  : i32 {
      %c1_i32_36 = arith.constant 1 : i32
      %44 = arith.subi %1, %c1_i32_36 : i32
      %45 = arith.subi %44, %arg14 : i32
      %c8_i32 = arith.constant 8 : i32
      %46 = arith.muli %45, %c8_i32 : i32
      %47 = tpu.assume_multiple %46, 8 : i32
      %48 = arith.index_cast %47 : i32 to index
      %c128 = arith.constant 128 : index
      %49 = vector.load %arg13[%48, %c128] : memref<64x256xf32, #tpu.memory_space<vmem>>, vector<8x128xf32>
      %50 = arith.truncf %arg15 : vector<8x32xf32> to vector<8x32xbf16>
      %cst_37 = arith.constant dense<0.000000e+00> : vector<8x128xf32>
      %51 = tpu.matmul %50, %10, %cst_37 {dimension_numbers = #tpu.dot_dimension_numbers<[1], [0], [0], [1], [0, 0, 1, 1], [], []>} : vector<8x32xbf16>, vector<32x128xbf16>, vector<8x128xf32> -> vector<8x128xf32>
      %52 = arith.addf %49, %51 : vector<8x128xf32>
      %53 = vector.extract_strided_slice %52 {offsets = [0, 0], sizes = [8, 32], strides = [1, 1]} : vector<8x128xf32> to vector<8x32xf32>
      %cst_38 = arith.constant 5.000000e-01 : f32
      %54 = vector.broadcast %cst_38 : f32 to vector<8x32xf32>
      %55 = arith.mulf %54, %53 : vector<8x32xf32>
      %56 = math.tanh %55 : vector<8x32xf32>
      %cst_39 = arith.constant 5.000000e-01 : f32
      %57 = vector.broadcast %cst_39 : f32 to vector<8x32xf32>
      %58 = arith.mulf %57, %56 : vector<8x32xf32>
      %cst_40 = arith.constant 5.000000e-01 : f32
      %59 = vector.broadcast %cst_40 : f32 to vector<8x32xf32>
      %60 = arith.addf %58, %59 : vector<8x32xf32>
      %61 = vector.extract_strided_slice %52 {offsets = [0, 32], sizes = [8, 32], strides = [1, 1]} : vector<8x128xf32> to vector<8x32xf32>
      %cst_41 = arith.constant 5.000000e-01 : f32
      %62 = vector.broadcast %cst_41 : f32 to vector<8x32xf32>
      %63 = arith.mulf %62, %61 : vector<8x32xf32>
      %64 = math.tanh %63 : vector<8x32xf32>
      %cst_42 = arith.constant 5.000000e-01 : f32
      %65 = vector.broadcast %cst_42 : f32 to vector<8x32xf32>
      %66 = arith.mulf %65, %64 : vector<8x32xf32>
      %cst_43 = arith.constant 5.000000e-01 : f32
      %67 = vector.broadcast %cst_43 : f32 to vector<8x32xf32>
      %68 = arith.addf %66, %67 : vector<8x32xf32>
      %69 = vector.extract_strided_slice %52 {offsets = [0, 64], sizes = [8, 32], strides = [1, 1]} : vector<8x128xf32> to vector<8x32xf32>
      %70 = math.tanh %69 : vector<8x32xf32>
      %71 = vector.extract_strided_slice %52 {offsets = [0, 96], sizes = [8, 32], strides = [1, 1]} : vector<8x128xf32> to vector<8x32xf32>
      %cst_44 = arith.constant 5.000000e-01 : f32
      %72 = vector.broadcast %cst_44 : f32 to vector<8x32xf32>
      %73 = arith.mulf %72, %71 : vector<8x32xf32>
      %74 = math.tanh %73 : vector<8x32xf32>
      %cst_45 = arith.constant 5.000000e-01 : f32
      %75 = vector.broadcast %cst_45 : f32 to vector<8x32xf32>
      %76 = arith.mulf %75, %74 : vector<8x32xf32>
      %cst_46 = arith.constant 5.000000e-01 : f32
      %77 = vector.broadcast %cst_46 : f32 to vector<8x32xf32>
      %78 = arith.addf %76, %77 : vector<8x32xf32>
      %79 = arith.mulf %68, %arg16 : vector<8x32xf32>
      %80 = arith.mulf %60, %70 : vector<8x32xf32>
      %81 = arith.addf %79, %80 : vector<8x32xf32>
      %82 = math.tanh %81 : vector<8x32xf32>
      %83 = arith.mulf %78, %82 : vector<8x32xf32>
      %84 = vector.broadcast %45 : i32 to vector<8x1xi32>
      %85 = arith.cmpi slt, %84, %0 : vector<8x1xi32>
      %86 = vector.shape_cast %85 : vector<8x1xi1> to vector<8x1xi1>
      %87 = vector.broadcast %86 : vector<8x1xi1> to vector<8x32xi1>
      %88 = arith.select %87, %83, %arg15 : vector<8x32xi1>, vector<8x32xf32>
      %89 = vector.shape_cast %85 : vector<8x1xi1> to vector<8x1xi1>
      %90 = vector.broadcast %89 : vector<8x1xi1> to vector<8x32xi1>
      %91 = arith.select %90, %81, %arg16 : vector<8x32xi1>, vector<8x32xf32>
      scf.yield %88, %91 : vector<8x32xf32>, vector<8x32xf32>
    }
    %18 = arith.truncf %14#0 : vector<8x32xf32> to vector<8x32xbf16>
    %c0_17 = arith.constant 0 : index
    %c0_18 = arith.constant 0 : index
    %19 = vector.load %arg7[%c0_17, %c0_18] : memref<32x32xbf16, #tpu.memory_space<vmem>>, vector<32x32xbf16>
    %cst_19 = arith.constant dense<0.000000e+00> : vector<8x32xf32>
    %20 = tpu.matmul %18, %19, %cst_19 {dimension_numbers = #tpu.dot_dimension_numbers<[1], [0], [0], [1], [0, 0, 1, 1], [], []>} : vector<8x32xbf16>, vector<32x32xbf16>, vector<8x32xf32> -> vector<8x32xf32>
    %21 = arith.truncf %17#0 : vector<8x32xf32> to vector<8x32xbf16>
    %c0_20 = arith.constant 0 : index
    %c0_21 = arith.constant 0 : index
    %22 = vector.load %arg8[%c0_20, %c0_21] : memref<32x32xbf16, #tpu.memory_space<vmem>>, vector<32x32xbf16>
    %cst_22 = arith.constant dense<0.000000e+00> : vector<8x32xf32>
    %23 = tpu.matmul %21, %22, %cst_22 {dimension_numbers = #tpu.dot_dimension_numbers<[1], [0], [0], [1], [0, 0, 1, 1], [], []>} : vector<8x32xbf16>, vector<32x32xbf16>, vector<8x32xf32> -> vector<8x32xf32>
    %24 = arith.addf %20, %23 : vector<8x32xf32>
    %c0_23 = arith.constant 0 : index
    %c0_24 = arith.constant 0 : index
    %25 = vector.load %arg9[%c0_23, %c0_24] : memref<1x32xf32, #tpu.memory_space<vmem>>, vector<1x32xf32>
    %26 = vector.broadcast %25 : vector<1x32xf32> to vector<8x32xf32>
    %27 = arith.addf %24, %26 : vector<8x32xf32>
    %cst_25 = arith.constant 0.000000e+00 : f32
    %28 = vector.broadcast %cst_25 : f32 to vector<8x32xf32>
    %29 = arith.maximumf %27, %28 : vector<8x32xf32>
    %30 = arith.truncf %29 : vector<8x32xf32> to vector<8x32xbf16>
    %c0_26 = arith.constant 0 : index
    %c0_27 = arith.constant 0 : index
    %31 = vector.load %arg10[%c0_26, %c0_27] : memref<32x1xbf16, #tpu.memory_space<vmem>>, vector<32x1xbf16>
    %cst_28 = arith.constant dense<0.000000e+00> : vector<8x1xf32>
    %32 = tpu.matmul %30, %31, %cst_28 {dimension_numbers = #tpu.dot_dimension_numbers<[1], [0], [0], [1], [0, 0, 1, 1], [], []>} : vector<8x32xbf16>, vector<32x1xbf16>, vector<8x1xf32> -> vector<8x1xf32>
    %c0_29 = arith.constant 0 : index
    %c0_30 = arith.constant 0 : index
    %33 = vector.load %arg11[%c0_29, %c0_30] : memref<1x1xf32, #tpu.memory_space<vmem>>, vector<1x1xf32>
    %34 = vector.broadcast %33 : vector<1x1xf32> to vector<8x1xf32>
    %35 = arith.addf %32, %34 : vector<8x1xf32>
    %cst_31 = arith.constant 5.000000e-01 : f32
    %36 = vector.broadcast %cst_31 : f32 to vector<8x1xf32>
    %37 = arith.mulf %36, %35 : vector<8x1xf32>
    %38 = math.tanh %37 : vector<8x1xf32>
    %cst_32 = arith.constant 5.000000e-01 : f32
    %39 = vector.broadcast %cst_32 : f32 to vector<8x1xf32>
    %40 = arith.mulf %39, %38 : vector<8x1xf32>
    %cst_33 = arith.constant 5.000000e-01 : f32
    %41 = vector.broadcast %cst_33 : f32 to vector<8x1xf32>
    %42 = arith.addf %40, %41 : vector<8x1xf32>
    %c0_34 = arith.constant 0 : index
    %c0_35 = arith.constant 0 : index
    %43 = vector.load %arg12[%c0_34, %c0_35] : memref<8x1xf32, #tpu.memory_space<vmem>>, vector<8x1xf32>
    tpu.vector_store %arg12[%c0_34, %c0_35], %42 {strides = array<i32>} : memref<8x1xf32, #tpu.memory_space<vmem>>, vector<8x1xf32>,
    return
  }
}

</mosaic_0001>

<bundles_post_ra>
// kernel: tpu_custom_call.1
= control target key start
LH: loop header
LB: loop body
LE: loop exit
PB: predicated region body
PF: predicated region fallthrough
CT: control target
= control target key end

     0   :  { %s1172_s0 = inlined_call_operand.vmem [shape: bf16[64,32], index: 0, kind: input, shape index: {}]   ;;  %s1173_s1 = inlined_call_operand.vmem [shape: s32[8,1], index: 1, kind: input, shape index: {}]   ;;  %s1174_s2 = inlined_call_operand.<no memory space> [shape: s32[1], index: 2, kind: input, shape index: {}]   ;;  %s1175_s3 = inlined_call_operand.vmem [shape: bf16[32,256], index: 3, kind: input, shape index: {}]   ;;  %s1176_s4 = inlined_call_operand.vmem [shape: bf16[32,128], index: 4, kind: input, shape index: {}]   ;;  %s1177_s5 = inlined_call_operand.hbm [shape: bf16[32,128], index: 5, kind: input, shape index: {}]   ;;  %s1178_s6 = inlined_call_operand.vmem [shape: f32[1,256], index: 6, kind: input, shape index: {}]   ;;  %s1179_s7 = inlined_call_operand.hbm [shape: bf16[32,32], index: 7, kind: input, shape index: {}]   ;;  %s1180_s8 = inlined_call_operand.hbm [shape: bf16[32,32], index: 8, kind: input, shape index: {}]   ;;  %s1181_s9 = inlined_call_operand.vmem [shape: f32[1,32], index: 9, kind: input, shape index: {}]   ;;  %s1182_s10 = inlined_call_operand.vmem [shape: bf16[32,1], index: 10, kind: input, shape index: {}]   ;;  %s1183_s11 = inlined_call_operand.<no memory space> [shape: f32[1,1], index: 11, kind: input, shape index: {}]   ;;  %s1184_s12 = inlined_call_operand.vmem [shape: f32[8,1], index: 12, kind: output, shape index: {}]  }
   0x1   :  { %v18_v0 = vstv %s1183_s11 }
   0x2   :  { %19 = vst [vmem:[#allocation4] sm:$0x1] %v18_v0 }
   0x3   :  { %20 = vsyncpa [#allocation6], 0 }
   0x4   :  { %21 = vsyncpa [#allocation8], 0  ;;  %s51_s25 = sshll.u32 %s1179_s7, 4  ;;  %s914_s26 = smov [#allocation7]   ;;  %s52_s25 = int_to_ptr.hbm [resolvable:$true] %s51_s25 }
   0x5   :  { %s53_s27 = sshll.u32 %s914_s26, 4  ;;  %s36_s30 = sshll.u32 %s1177_s5, 4  ;;  %s54_s27 = int_to_ptr.vmem [resolvable:$true] %s53_s27  ;;  %s37_s30 = int_to_ptr.hbm [resolvable:$true] %s36_s30 }
   0x6   :  { %s915_s13 = smov 64   ;;  %s916_s14 = smov 4  }
   0x7   :  { %59 = dma.hbm_to_vmem [thread:$0]  %s52_s25, 256, %s54_s27, [#allocation8], %s915_s13, %s915_s13, %s916_s14  }
   0x8   :  { %s917_s11 = smov [#allocation5]   ;;  %s64_s18 = sshll.u32 %s1180_s8, 4  ;;  %s65_s18 = int_to_ptr.hbm [resolvable:$true] %s64_s18 }
   0x9   :  { %s38_s15 = sshll.u32 %s917_s11, 4  ;;  %s918_s7 = smov [#allocation9]   ;;  %s39_s15 = int_to_ptr.vmem [resolvable:$true] %s38_s15 }
   0xa   :  { %44 = dma.hbm_to_vmem [thread:$0]  %s37_s30, 256, %s39_s15, [#allocation6], %s915_s13, %s915_s13, %s916_s14  }
   0xb   :  { %s66_s19 = sshll.u32 %s918_s7, 4  ;;  %s67_s19 = int_to_ptr.vmem [resolvable:$true] %s66_s19 }
   0xc   :  { %72 = dma.hbm_to_vmem [thread:$0]  %s65_s18, 256, %s67_s19, [#allocation8], %s915_s13, %s915_s13, %s916_s14  }
   0xd   :  { %878 = dma.done.wait [#allocation6], 256  }
   0xe   :  { %879 = vsyncadd [#allocation6], 4294967040 }
   0xf   :  { %880 = dma.done.wait [#allocation8], 512  }
  0x10   :  { %881 = vsyncadd [#allocation8], 4294966784  ;;  %v1006_v1 = vld [vmem:[%s1173_s1] sm:$0xff]  ;;  %v1021_v4 = vld [vmem:[%s1176_s4 + $0x8] sm:$0xf]  ;;  %vm152_vm0 = vcmask 261120  }
  0x11   :  { %v1011_v2 = vld [vmem:[%s1176_s4] sm:$0xf]  ;;  %v1016_v3 = vld [vmem:[%s1176_s4] sm:$0xf0]  ;;  %v1026_v5 = vld [vmem:[%s1176_s4 + $0x8] sm:$0xf0] }
  0x12   :  { %v1028_v6 = vld [vmem:[#allocation5] sm:$0xf]  ;;  %v1030_v7 = vld [vmem:[#allocation5] sm:$0xf0]  ;;  %v1032_v8 = vld [vmem:[#allocation5 + $0x8] sm:$0xf] }
  0x13   :  { %v1034_v9 = vld [vmem:[#allocation5 + $0x8] sm:$0xf0]  ;;  %v661_v11 = vld [vmem:[%s1175_s3 + $0x14] sm:$0xf0]  ;;  %v660_v12 = vld [vmem:[%s1175_s3 + $0x14] sm:$0xf] }
  0x14   :  { %v586_v10 = vld [vmem:[%s1175_s3 + $0x10] sm:$0xf]  ;;  %v588_v14 = vld [vmem:[%s1175_s3 + $0x18] sm:$0xf0]  ;;  %v578_v15 = vld [vmem:[%s1175_s3] sm:$0xf] }
  0x15   :  { %v587_v13 = vor.u32 %v661_v11, %v586_v10  ;;  %v659_v16 = vld [vmem:[%s1175_s3 + $0x4] sm:$0xf0]  ;;  %v591_v17 = vor.u32 %v660_v12, %v588_v14  ;;  %v658_v18 = vld [vmem:[%s1175_s3 + $0x4] sm:$0xf]  ;;  %v580_v19 = vld [vmem:[%s1175_s3 + $0x8] sm:$0xf0] }
  0x16   :  { %v579_v20 = vor.u32 %v659_v16, %v578_v15  ;;  %v583_v21 = vor.u32 %v658_v18, %v580_v19  ;;  %v654_v22 = vld [vmem:[%s1172_s0] sm:$0xff]  ;;  %v656_v23 = vld [vmem:[%s1172_s0 + $0x10] sm:$0xff]  ;;  %v655_v24 = vld [vmem:[%s1172_s0 + $0x8] sm:$0xff]  ;;  %p600_p0 = scmp.le.s32.totalorder %s1174_s2, 0  ;;  %v1086_v61 = vmov 0.0  }
  0x17   :  { %171 = vmatpush.bf16.msra.mxu0 %v587_v13  ;;  %674 = vmatpush.bf16.msra.mxu2 %v587_v13  ;;  %v657_v25 = vld [vmem:[%s1172_s0 + $0x18] sm:$0xff]  ;;  %v106_v26 = vld [vmem:[%s1178_s6] sm:$0x3]  ;;  %s1092_s30 = smov (!%p600_p0), 0  }
  0x18   :  { %200 = vmatpush.bf16.msra.mxu1 %v591_v17  ;;  %676 = vmatpush.bf16.msra.mxu3 %v591_v17  ;;  %v108_v27 = vperm.slane %v106_v26, 0  ;;  %v109_v28 = vperm.slane %v106_v26, 1 }
  0x1b   :  { %172 = vmatpush.bf16.msra.mxu0 %v579_v20  ;;  %675 = vmatpush.bf16.msra.mxu2 %v579_v20 }
  0x1c   :  { %201 = vmatpush.bf16.msra.mxu1 %v583_v21  ;;  %677 = vmatpush.bf16.msra.mxu3 %v583_v21 }
  0x1e   :  { %592 = vmatmul.msk.bf16.vlgmr.msra.gmra.mxu0 %vm152_vm0, %v654_v22  ;;  %594 = vmatmul.msk.bf16.vlgmr.msra.gmra.mxu2 %vm152_vm0, %v656_v23 }
  0x1f   :  { %596 = vmatmul.msk.bf16.vlgmr.msra.gmra.mxu1 %vm152_vm0, %v654_v22  ;;  %598 = vmatmul.msk.bf16.vlgmr.msra.gmra.mxu3 %vm152_vm0, %v656_v23 }
  0x2e   :  { %593 = vmatmul.msk.bf16.gmra.mxu0 %vm152_vm0, %v655_v24  ;;  %595 = vmatmul.msk.bf16.gmra.mxu2 %vm152_vm0, %v657_v25 }
  0x2f   :  { %597 = vmatmul.msk.bf16.gmra.mxu1 %vm152_vm0, %v655_v24  ;;  %599 = vmatmul.msk.bf16.gmra.mxu3 %vm152_vm0, %v657_v25 }
  0x9b   :  { %v174_v29 = vpop.f32.mrf.mxu0 }
  0x9c   :  { %v175_v30 = vadd.f32 %v174_v29, %v108_v27  ;;  %v203_v31 = vpop.f32.mrf.mxu1 }
  0x9d   :  { %v204_v32 = vadd.f32 %v203_v31, %v109_v28 }
  0x9e   :  { %223 = vst [vmem:[#allocation2] sm:$0xff] %v175_v30 }
  0x9f   :  { %224 = vst [vmem:[#allocation2 + $0x8] sm:$0xff] %v204_v32 }
  0xa1   :  { %v184_v33 = vpop.f32.mrf.mxu2 }
  0xa2   :  { %v185_v34 = vadd.f32 %v184_v33, %v108_v27  ;;  %v213_v35 = vpop.f32.mrf.mxu3 }
  0xa3   :  { %v214_v36 = vadd.f32 %v213_v35, %v109_v28  ;;  %v176_v37 = vpop.f32.mrf.mxu0 }
  0xa4   :  { %231 = vst [vmem:[#allocation2 + $0x40] sm:$0xff] %v185_v34  ;;  %v177_v38 = vadd.f32 %v176_v37, %v108_v27  ;;  %v205_v39 = vpop.f32.mrf.mxu1 }
  0xa5   :  { %232 = vst [vmem:[#allocation2 + $0x48] sm:$0xff] %v214_v36  ;;  %v206_v40 = vadd.f32 %v205_v39, %v109_v28 }
  0xa6   :  { %225 = vst [vmem:[#allocation2 + $0x10] sm:$0xff] %v177_v38 }
  0xa7   :  { %226 = vst [vmem:[#allocation2 + $0x18] sm:$0xff] %v206_v40 }
  0xa9   :  { %v186_v41 = vpop.f32.mrf.mxu2 }
  0xaa   :  { %v187_v42 = vadd.f32 %v186_v41, %v108_v27  ;;  %v215_v43 = vpop.f32.mrf.mxu3 }
  0xab   :  { %v216_v44 = vadd.f32 %v215_v43, %v109_v28  ;;  %v179_v45 = vpop.f32.mrf.mxu0 }
  0xac   :  { %233 = vst [vmem:[#allocation2 + $0x50] sm:$0xff] %v187_v42  ;;  %v180_v46 = vadd.f32 %v179_v45, %v108_v27  ;;  %v208_v47 = vpop.f32.mrf.mxu1 }
  0xad   :  { %234 = vst [vmem:[#allocation2 + $0x58] sm:$0xff] %v216_v44  ;;  %v209_v48 = vadd.f32 %v208_v47, %v109_v28 }
  0xae   :  { %227 = vst [vmem:[#allocation2 + $0x20] sm:$0xff] %v180_v46 }
  0xaf   :  { %228 = vst [vmem:[#allocation2 + $0x28] sm:$0xff] %v209_v48 }
  0xb1   :  { %v189_v49 = vpop.f32.mrf.mxu2 }
  0xb2   :  { %v190_v50 = vadd.f32 %v189_v49, %v108_v27  ;;  %v218_v51 = vpop.f32.mrf.mxu3 }
  0xb3   :  { %v219_v52 = vadd.f32 %v218_v51, %v109_v28  ;;  %v181_v53 = vpop.f32.mrf.mxu0 }
  0xb4   :  { %235 = vst [vmem:[#allocation2 + $0x60] sm:$0xff] %v190_v50  ;;  %v182_v54 = vadd.f32 %v181_v53, %v108_v27  ;;  %v210_v55 = vpop.f32.mrf.mxu1 }
  0xb5   :  { %236 = vst [vmem:[#allocation2 + $0x68] sm:$0xff] %v219_v52  ;;  %v211_v56 = vadd.f32 %v210_v55, %v109_v28 }
  0xb6   :  { %229 = vst [vmem:[#allocation2 + $0x30] sm:$0xff] %v182_v54 }
  0xb7   :  { %230 = vst [vmem:[#allocation2 + $0x38] sm:$0xff] %v211_v56 }
  0xb9   :  { %v191_v57 = vpop.f32.mrf.mxu2  ;;  %542 = sbr.rel (%p600_p0) target bundleno = 803 (0x323), region = 90 }
  0xba   :  { %v192_v58 = vadd.f32 %v191_v57, %v108_v27  ;;  %v220_v59 = vpop.f32.mrf.mxu3 }
  0xbb   :  { %v221_v60 = vadd.f32 %v220_v59, %v109_v28 }
  0xbc   :  { %237 = vst [vmem:[#allocation2 + $0x70] sm:$0xff] %v192_v58 }
  0xbd   :  { %238 = vst [vmem:[#allocation2 + $0x78] sm:$0xff] %v221_v60 }
  0xbe   :  { %v882_v62 = vmov 0.0   ;;  %v886_v63 = vmov 0.0  }
  0xbf LB: > { %v611_v0 = vor.u32 %v1026_v5, %v1021_v4  ;;  %v262_v10 = vpack.c.bf16 %v888_v63, %v888_v63  ;;  %v607_v11 = vor.u32 %v1016_v3, %v1011_v2  ;;  %s919_s13 = smov 32   ;;  %s601_s14 = sshll.u32 %s892_s30, 3  ;;  %v317_v18 = vstv %s892_s30  ;;  %s892_s30 = sphi %s1092_s30, %s250_s30   ;;  %v888_v63 = vphi %v886_v63, %v887_v63   ;;  %v884_v62 = vphi %v882_v62, %v325_v62  }
  0xc0   : > { %s256_s4 = sshra.s32 %s601_s14, 3  ;;  %s920_s16 = smov 64   ;;  %v921_v19 = vmov 0   ;;  %vm318_vm1 = vcmp.lt.s32.totalorder %v317_v18, %v1006_v1 }
  0xc1   : > { %287 = vmatpush.bf16.msra.mxu0 %v611_v0  ;;  %264 = vrot.lane.b32.xlu0 %v262_v10, %s919_s13  ;;  %s666_s11 = sshll.u32 %s256_s4, 4  ;;  %v319_v20 = vsel %vm318_vm1, 1, %v921_v19  ;;  %s250_s30 = sadd.s32 1, %s892_s30  }
  0xc2   : > { %s260_s15 = scalar_lea.vmem [#allocation2], %s666_s11  ;;  %754 = vset.pattern.permute.xlu2 %v921_v19  ;;  %755 = vset.pattern.permute.xlu0 %v921_v19  ;;  %p249_p1 = scmp.ge.s32.totalorder %s250_s30, %s1174_s2 }
  0xc3   : > { %321 = vperm.xlu2 %754, %v319_v20  }
  0xc4   : > { %v261_v13 = vld [vmem:[%s260_s15] sm:$0xff] }
  0xc5   : > { %288 = vmatpush.bf16.msra.mxu0 %v607_v11 }
 0x11d   : > { %v322_v27 = vpop.permute.xlu2 %321 }
 0x11e   : > { %vm323_vm2 = vcmp.eq.s32.totalorder %v322_v27, 1 }
 0x133   : > { %v265_v12 = vpop.permute.xlu0 %264 }
 0x134   : > { %612 = vmatmul.msk.bf16.vlgmr.msra.gmra.mxu0 %vm152_vm0, %v265_v12 }
 0x1b1   : > { %v290_v14 = vpop.f32.mrf.mxu0 }
 0x1b2   : > { %v294_v15 = vadd.f32 %v290_v14, %v261_v13 }
 0x1b4   : > { %756 = vtanh.f32 %v294_v15  ;;  %v295_v21 = vmul.f32 0.5, %v294_v15 }
 0x1b6   : > { %758 = vtanh.f32 %v295_v21 }
 0x1b9   : > { %v292_v16 = vpop.f32.mrf.mxu0 }
 0x1ba   : > { %v757_v17 = vpop.eup %756 }
 0x1bb   : > { %302 = vrot.lane.b32.xlu0 %v757_v17, %s920_s16 }
 0x1bc   : > { %v759_v22 = vpop.eup %758 }
 0x1bd   : > { %v297_v23 = vmul.f32 0.5, %v759_v22 }
 0x1bf   : > { %v298_v24 = vadd.f32 0.5, %v297_v23 }
 0x1c1   : > { %v300_v28 = vmul.f32 %v884_v62, %v298_v24 }
 0x22d   : > { %v303_v25 = vpop.permute.xlu0 %302 }
 0x22e   : > { %v305_v26 = vmul.f32 %v303_v25, %v298_v24 }
 0x230   : > { %307 = vrot.lane.b32.xlu1 %v305_v26, %s919_s13 }
 0x2a2   : > { %v308_v29 = vpop.permute.xlu1 %307 }
 0x2a3   : > { %v310_v30 = vadd.f32 %v308_v29, %v300_v28 }
 0x2a5   : > { %760 = vtanh.f32 %v310_v30  ;;  %v325_v62 = vsel %vm323_vm2, %v310_v30, %v884_v62  }
 0x2ab   : > { %v761_v31 = vpop.eup %760 }
 0x2ac   : > { %313 = vrot.lane.b32.xlu1 %v761_v31, %s920_s16 }
 0x31e   : > { %v314_v32 = vpop.permute.xlu1 %313  ;;  %252 = sbr.rel (!%p249_p1) target bundleno = 191 (0xbf), region = 96 }
 0x31f   : > { %v316_v33 = vmul.f32 %v314_v32, %v298_v24 }
 0x321   : > { %v324_v34 = vsel %vm323_vm2, %v316_v33, %v888_v63  }
 0x322   : > { %v887_v63 = vmov %v324_v34   ;;  %v1185_v61 = vmov (%p249_p1), %v324_v34 }
 0x323 PF:  { %v1118_v35 = vmov 0.0   ;;  %553 = sbr.rel (%p600_p0) target bundleno = 1421 (0x58d), region = 101  ;;  %s1126_s5 = smov (!%p600_p0), 0   ;;  %v896_v61 = vphi %v1086_v61, %v1185_v61  }
 0x328   :  { %v1124_v36 = vmov 0.0   ;;  %v902_v37 = vmov 0.0  }
 0x329 LB: > { %v625_v2 = vor.u32 %v1034_v9, %v1032_v8  ;;  %v343_v3 = vpack.c.bf16 %v904_v37, %v904_v37  ;;  %v621_v4 = vor.u32 %v1030_v7, %v1028_v6  ;;  %s922_s20 = smov 32   ;;  %s614_s8 = sadd.s32 4294967295, %s1174_s2  ;;  %v924_v44 = vmov 0   ;;  %s908_s5 = sphi %s1126_s5, %s329_s5   ;;  %v904_v37 = vphi %v902_v37, %v903_v37   ;;  %v900_v36 = vphi %v1124_v36, %v406_v36  }
 0x32a   : > { %s335_s23 = ssub.s32 %s614_s8, %s908_s5  ;;  %s923_s27 = smov 64   ;;  %762 = vset.pattern.permute.xlu2 %v924_v44  ;;  %763 = vset.pattern.permute.xlu0 %v924_v44 }
 0x32b   : > { %368 = vmatpush.bf16.msra.mxu0 %v625_v2  ;;  %345 = vrot.lane.b32.xlu0 %v343_v3, %s922_s20  ;;  %s615_s3 = sshll.u32 %s335_s23, 3  ;;  %v398_v43 = vstv %s335_s23  ;;  %s329_s5 = sadd.s32 1, %s908_s5  }
 0x32c   : > { %s337_s24 = sshra.s32 %s615_s3, 3  ;;  %vm399_vm3 = vcmp.lt.s32.totalorder %v398_v43, %v1006_v1  ;;  %p328_p2 = scmp.ge.s32.totalorder %s329_s5, %s1174_s2 }
 0x32d   : > { %s667_s25 = sshll.u32 %s337_s24, 4  ;;  %v400_v45 = vsel %vm399_vm3, 1, %v924_v44 }
 0x32e   : > { %s341_s26 = scalar_lea.vmem [#allocation2], %s667_s25  ;;  %402 = vperm.xlu2 %762, %v400_v45  }
 0x32f   : > { %369 = vmatpush.bf16.msra.mxu0 %v621_v4  ;;  %v342_v38 = vld [vmem:[%s341_s26 + $0x8] sm:$0xff] }
 0x388   : > { %v403_v52 = vpop.permute.xlu2 %402 }
 0x389   : > { %vm404_vm4 = vcmp.eq.s32.totalorder %v403_v52, 1 }
 0x39d   : > { %v346_v5 = vpop.permute.xlu0 %345 }
 0x39e   : > { %626 = vmatmul.msk.bf16.vlgmr.msra.gmra.mxu0 %vm152_vm0, %v346_v5 }
 0x41b   : > { %v371_v39 = vpop.f32.mrf.mxu0 }
 0x41c   : > { %v375_v40 = vadd.f32 %v371_v39, %v342_v38 }
 0x41e   : > { %764 = vtanh.f32 %v375_v40  ;;  %v376_v46 = vmul.f32 0.5, %v375_v40 }
 0x420   : > { %766 = vtanh.f32 %v376_v46 }
 0x423   : > { %v373_v41 = vpop.f32.mrf.mxu0 }
 0x424   : > { %v765_v42 = vpop.eup %764 }
 0x425   : > { %383 = vrot.lane.b32.xlu0 %v765_v42, %s923_s27 }
 0x426   : > { %v767_v47 = vpop.eup %766 }
 0x427   : > { %v378_v48 = vmul.f32 0.5, %v767_v47 }
 0x429   : > { %v379_v49 = vadd.f32 0.5, %v378_v48 }
 0x42b   : > { %v381_v53 = vmul.f32 %v900_v36, %v379_v49 }
 0x497   : > { %v384_v50 = vpop.permute.xlu0 %383 }
 0x498   : > { %v386_v51 = vmul.f32 %v384_v50, %v379_v49 }
 0x49a   : > { %388 = vrot.lane.b32.xlu1 %v386_v51, %s922_s20 }
 0x50c   : > { %v389_v54 = vpop.permute.xlu1 %388 }
 0x50d   : > { %v391_v55 = vadd.f32 %v389_v54, %v381_v53 }
 0x50f   : > { %768 = vtanh.f32 %v391_v55  ;;  %v406_v36 = vsel %vm404_vm4, %v391_v55, %v900_v36  }
 0x515   : > { %v769_v56 = vpop.eup %768 }
 0x516   : > { %394 = vrot.lane.b32.xlu1 %v769_v56, %s923_s27 }
 0x588   : > { %v395_v57 = vpop.permute.xlu1 %394  ;;  %331 = sbr.rel (!%p328_p2) target bundleno = 809 (0x329), region = 107 }
 0x589   : > { %v397_v58 = vmul.f32 %v395_v57, %v379_v49 }
 0x58b   : > { %v405_v59 = vsel %vm404_vm4, %v397_v58, %v904_v37  }
 0x58c   : > { %v903_v37 = vmov %v405_v59   ;;  %v1186_v35 = vmov (%p328_p2), %v405_v59 }
 0x58d PF:  { %v412_v60 = vpack.c.bf16 %v912_v35, %v912_v35  ;;  %v671_v62 = vld [vmem:[#allocation9 + $0x8] sm:$0xff]  ;;  %s925_s6 = smov 32   ;;  %v670_v63 = vld [vmem:[#allocation9] sm:$0xff]  ;;  %v407_v0 = vpack.c.bf16 %v896_v61, %v896_v61  ;;  %v669_v10 = vld [vmem:[#allocation7 + $0x8] sm:$0xff]  ;;  %vm526_vm5 = vcmask 7168   ;;  %v912_v35 = vphi %v1118_v35, %v1186_v35  }
 0x58e   :  { %441 = vmatpush.bf16.msra.mxu0 %v671_v62  ;;  %472 = vmatpush.bf16.msra.mxu1 %v669_v10  ;;  %v668_v11 = vld [vmem:[#allocation7] sm:$0xff]  ;;  %v673_v7 = vld [vmem:[%s1182_s10 + $0x8] sm:$0xff]  ;;  %v672_v8 = vld [vmem:[%s1182_s10] sm:$0xff] }
 0x58f   :  { %418 = vrot.lane.b32.xlu0 %v412_v60, %s925_s6  ;;  %515 = vmatpush.bf16.msra.mxu2 %v673_v7  ;;  %v770_v61 = vld [vmem:[%s1181_s9] ss:$0 sm:$0xff] }
 0x590   :  { %v771_v19 = vld [vmem:[#allocation4] ss:$0 sm:$0xff] }
 0x592   :  { %442 = vmatpush.bf16.msra.mxu0 %v670_v63  ;;  %473 = vmatpush.bf16.msra.mxu1 %v668_v11 }
 0x593   :  { %516 = vmatpush.bf16.msra.mxu2 %v672_v8 }
 0x597   :  { %449 = vrot.lane.b32.xlu0 %v407_v0, %s925_s6 }
 0x601   :  { %v419_v1 = vpop.permute.xlu0 %418 }
 0x602   :  { %635 = vmatmul.msk.bf16.vlgmr.msra.gmra.mxu0 %vm152_vm0, %v419_v1 }
 0x609   :  { %v450_v6 = vpop.permute.xlu0 %449 }
 0x60a   :  { %644 = vmatmul.msk.bf16.vlgmr.msra.gmra.mxu1 %vm152_vm0, %v450_v6 }
 0x67f   :  { %v444_v9 = vpop.f32.mrf.mxu0 }
 0x687   :  { %v446_v12 = vpop.f32.mrf.mxu0  ;;  %v475_v13 = vpop.f32.mrf.mxu1 }
 0x688   :  { %v476_v14 = vadd.f32 %v475_v13, %v444_v9 }
 0x68a   :  { %v483_v15 = vadd.f32 %v770_v61, %v476_v14 }
 0x68c   :  { %v484_v16 = vmax.f32 %v483_v15, 0.0 }
 0x68e   :  { %v485_v17 = vpack.c.bf16 %v484_v16, %v484_v16 }
 0x68f   :  { %v477_v18 = vpop.f32.mrf.mxu1 }
 0x690   :  { %653 = vmatmul.msk.bf16.vlgmr.msra.gmra.mxu2 %vm152_vm0, %v485_v17 }
 0x713   :  { %v518_v20 = vpop.f32.mrf.mxu2 }
 0x714   :  { %v519_v21 = vadd.f32 %v771_v19, %v518_v20 }
 0x716   :  { %v522_v22 = vmul.f32 0.5, %v519_v21 }
 0x718   :  { %772 = vtanh.f32 %v522_v22 }
 0x71b   :  { %v520_v23 = vpop.f32.mrf.mxu2 }
 0x71e   :  { %v773_v24 = vpop.eup %772 }
 0x71f   :  { %v524_v25 = vmul.f32 0.5, %v773_v24 }
 0x721   :  { %v525_v26 = vadd.f32 0.5, %v524_v25 }
 0x723   :  { %527 = vst.msk [vmem:[%s1184_s12] sm:$0xff] %vm526_vm5, %v525_v26 }
 0x724   :  { %532 = vsyncpa [#allocation6], 1 }
 0x725   :  { %533 = vsyncpa [#allocation8], 1 }

</bundles_post_ra>
